<compile_context>
chip_gen: v5e
topology: v5e:2x2
jax: 0.10.0
libtpu: 0.0.40
codegen_flags: <defaults>
</compile_context>

<pallas_src>
import jax
import jax.numpy as jnp
import numpy as np
from jax import lax
from jax.experimental import pallas as pl
from jax.experimental.pallas import tpu as pltpu

LANE = 128
SUBLANE = 8


def _round_up(x, m):
    return ((x + m - 1) // m) * m


def _logreg_kernel(x_ref, w_ref, b_ref, o_ref):
    # x_ref : (tile_n, ft_in)       f32   streamed row tile
    # w_ref : (nb_classes, ft_in)   f32   resident (constant index_map)
    # b_ref : (1, nb_classes)       f32   resident
    # o_ref : (tile_n, nb_classes)        narrow output tile (no class padding in HBM)
    acc = lax.dot_general(
        x_ref[...], w_ref[...],
        dimension_numbers=(((1,), (1,)), ((), ())),   # contract ft_in  (x @ W^T)
        preferred_element_type=jnp.float32,
    )
    o_ref[...] = (acc + b_ref[...]).astype(o_ref.dtype)


def _pick_tile_n(n_rows, ft_in, nb_classes, out_bytes):
    """VMEM-budget-aware row tile + explicit scoped-VMEM limit (v5e/v6e/v7x)."""
    try:
        vmem_phys = int(pltpu.get_tpu_info().vmem_capacity_bytes)
    except Exception:
        vmem_phys = 64 * 1024 * 1024            # v7x per-TC size = smallest current gen
    vmem_limit = int(min(vmem_phys // 2, 32 * 1024 * 1024))

    ft_lane = _round_up(ft_in, LANE)            # VMEM lane padding of the x block
    c_lane = _round_up(nb_classes, LANE)        # VMEM lane padding of the out block
    # Resident weight + bias (double-buffered by the pipeline even though their
    # index_map is constant; pl.Buffered(1) would save this, negligible at ft_in=32).
    resident = 2 * (_round_up(nb_classes, SUBLANE) * ft_lane * 4 + SUBLANE * c_lane * 4)
    # Streamed per-row cost: double-buffered x tile + double-buffered out tile.
    per_row = 2 * ft_lane * 4 + 2 * c_lane * out_bytes

    budget = vmem_limit - resident - 2 * 1024 * 1024     # headroom for internal scratch
    t = max(SUBLANE, budget // per_row)
    t = min(t, 8192)                            # amortize ~0.35us/step pipeline overhead
    t = min(t, _round_up(n_rows, SUBLANE))      # don't over-tile small inputs
    t = max(SUBLANE, (t // SUBLANE) * SUBLANE)
    # TODO(synk): if nb_classes*ft_in ever outgrows VMEM, add K-tiling with an f32
    # accumulator instead of relying on the tile_n=8 fallback.
    return int(t), vmem_limit


def logreg_forward(seq, weight, bias, *, tile_n=None, out_dtype=jnp.float32):
    """Pallas equivalent of LogReg.forward == nn.Linear(ft_in, nb_classes)(seq).

    seq:    (N, ft_in)          float32
    weight: (nb_classes, ft_in) float32   (PyTorch layout, used as-is)
    bias:   (nb_classes,)       float32
    returns (N, nb_classes) in `out_dtype` (float32 default; pass bfloat16 to halve
            output write bytes if downstream tolerates it).
    """
    seq = jnp.asarray(seq, jnp.float32)
    weight = jnp.asarray(weight, jnp.float32)
    n, ft_in = seq.shape
    nb_classes = weight.shape[0]
    bias2d = jnp.asarray(bias, jnp.float32).reshape(1, nb_classes)

    auto_tile, vmem_limit = _pick_tile_n(
        n, ft_in, nb_classes, np.dtype(out_dtype).itemsize
    )
    if tile_n is None:
        tile_n = auto_tile
    tile_n = max(SUBLANE, (int(tile_n) // SUBLANE) * SUBLANE)
    tile_n = min(tile_n, _round_up(n, SUBLANE))
    grid_n = pl.cdiv(n, tile_n)

    # TODO(synk): with ft_in=32 only 32/128 lanes of each x vreg are live; packing
    # features 128-lane dense upstream would cut x read bytes further but changes
    # the (N, ft_in) interface.
    def _run(dim_sems):
        return pl.pallas_call(
            _logreg_kernel,
            out_shape=jax.ShapeDtypeStruct((n, nb_classes), out_dtype),
            grid_spec=pltpu.PrefetchScalarGridSpec(
                num_scalar_prefetch=0,
                grid=(grid_n,),
                in_specs=[
                    pl.BlockSpec((tile_n, ft_in), lambda i: (i, 0)),       # streamed x
                    pl.BlockSpec((nb_classes, ft_in), lambda i: (0, 0)),   # resident W
                    pl.BlockSpec((1, nb_classes), lambda i: (0, 0)),       # resident b
                ],
                out_specs=pl.BlockSpec((tile_n, nb_classes), lambda i: (i, 0)),
            ),
            compiler_params=pltpu.CompilerParams(
                dimension_semantics=dim_sems,
                vmem_limit_bytes=vmem_limit,
            ),
        )(seq, weight, bias2d)

    if grid_n >= 2:
        # v7x: shard the row axis across both TensorCores; each grid step writes a
        # disjoint output tile so this is purely parallel. Fall back to "parallel"
        # on chips/toolchains where CORE_PARALLEL is rejected.
        try:
            return jax.block_until_ready(_run((pltpu.CORE_PARALLEL,)))
        except Exception:
            pass
    return _run(("parallel",))


def init_logreg_params(key, ft_in, nb_classes):
    """Matches the PyTorch module: xavier_uniform_ for weight, zeros for bias."""
    bound = float(jnp.sqrt(6.0 / (ft_in + nb_classes)))
    weight = jax.random.uniform(
        key, (nb_classes, ft_in), minval=-bound, maxval=bound, dtype=jnp.float32
    )
    bias = jnp.zeros((nb_classes,), dtype=jnp.float32)
    return weight, bias


def _reference(seq, weight, bias):
    return jnp.dot(seq, weight.T, precision=lax.Precision.HIGHEST) + bias


if __name__ == "__main__":
    key = jax.random.PRNGKey(0)
    k_x, k_w, k_x2 = jax.random.split(key, 3)

    N, ft_in, nb_classes = 8, 32, 8          # small shapes consistent with LogReg
    seq = jax.random.normal(k_x, (N, ft_in), dtype=jnp.float32)
    weight, bias = init_logreg_params(k_w, ft_in, nb_classes)

    out = logreg_forward(seq, weight, bias)
    out = jax.block_until_ready(out)
    assert out.shape == (N, nb_classes)
    assert jnp.allclose(out, _reference(seq, weight, bias), atol=2e-2, rtol=2e-2)

    # Second check: non-multiple-of-8 rows + multi-step pipelined grid (ragged edge
    # block handled inside the kernel, no wrapper-side pad or output slice).
    N2 = 41
    seq2 = jax.random.normal(k_x2, (N2, ft_in), dtype=jnp.float32)
    out2 = logreg_forward(seq2, weight, bias, tile_n=8)
    out2 = jax.block_until_ready(out2)
    assert out2.shape == (N2, nb_classes)
    assert jnp.allclose(out2, _reference(seq2, weight, bias), atol=2e-2, rtol=2e-2)

    print("KERNEL_OK")
</pallas_src>

<mosaic_0001>
module attributes {stable_mosaic.version = 11 : i64} {
  func.func @_logreg_kernel(%arg0: i32, %arg1: memref<8x32xf32, #tpu.memory_space<vmem>>, %arg2: memref<8x32xf32, #tpu.memory_space<vmem>>, %arg3: memref<1x8xf32, #tpu.memory_space<vmem>>, %arg4: memref<8x8xf32, #tpu.memory_space<vmem>>) attributes {dimension_semantics = [#tpu.dimension_semantics<parallel>], iteration_bounds = array<i64: 1>, scalar_prefetch = 0 : i64, scratch_operands = 0 : i64, tpu.core_type = #tpu.core_type<tc>, window_params = [{transform_indices = @transform_0, window_bounds = array<i64: 8, 32>}, {pipeline_mode = #tpu.pipeline_mode<synchronous>, transform_indices = @transform_1, window_bounds = array<i64: 8, 32>}, {pipeline_mode = #tpu.pipeline_mode<synchronous>, transform_indices = @transform_2, window_bounds = array<i64: 1, 8>}, {transform_indices = @transform_3, window_bounds = array<i64: 8, 8>}]} {
    %c0 = arith.constant 0 : index
    %c0_0 = arith.constant 0 : index
    %0 = vector.load %arg1[%c0, %c0_0] : memref<8x32xf32, #tpu.memory_space<vmem>>, vector<8x32xf32>
    %c0_1 = arith.constant 0 : index
    %c0_2 = arith.constant 0 : index
    %1 = vector.load %arg2[%c0_1, %c0_2] : memref<8x32xf32, #tpu.memory_space<vmem>>, vector<8x32xf32>
    %cst = arith.constant dense<0.000000e+00> : vector<8x8xf32>
    %2 = tpu.matmul %0, %1, %cst {dimension_numbers = #tpu.dot_dimension_numbers<[1], [1], [0], [0], [0, 0, 1, 0], [], []>} : vector<8x32xf32>, vector<8x32xf32>, vector<8x8xf32> -> vector<8x8xf32>
    %c0_3 = arith.constant 0 : index
    %c0_4 = arith.constant 0 : index
    %3 = vector.load %arg3[%c0_3, %c0_4] : memref<1x8xf32, #tpu.memory_space<vmem>>, vector<1x8xf32>
    %4 = vector.broadcast %3 : vector<1x8xf32> to vector<8x8xf32>
    %5 = arith.addf %2, %4 : vector<8x8xf32>
    %c0_5 = arith.constant 0 : index
    %c0_6 = arith.constant 0 : index
    %6 = vector.load %arg4[%c0_5, %c0_6] : memref<8x8xf32, #tpu.memory_space<vmem>>, vector<8x8xf32>
    tpu.vector_store %arg4[%c0_5, %c0_6], %5 {strides = array<i32>} : memref<8x8xf32, #tpu.memory_space<vmem>>, vector<8x8xf32>,
    return
  }
  func.func @transform_0(%arg0: i32) -> (i32, i32) {
    %c0_i32 = arith.constant 0 : i32
    %c0_i32_0 = arith.constant 0 : i32
    return %arg0, %c0_i32 : i32, i32
  }
  func.func @transform_1(%arg0: i32) -> (i32, i32) {
    %c0_i32 = arith.constant 0 : i32
    %c0_i32_0 = arith.constant 0 : i32
    %c0_i32_1 = arith.constant 0 : i32
    return %c0_i32, %c0_i32_0 : i32, i32
  }
  func.func @transform_2(%arg0: i32) -> (i32, i32) {
    %c0_i32 = arith.constant 0 : i32
    %c0_i32_0 = arith.constant 0 : i32
    %c0_i32_1 = arith.constant 0 : i32
    return %c0_i32, %c0_i32_0 : i32, i32
  }
  func.func @transform_3(%arg0: i32) -> (i32, i32) {
    %c0_i32 = arith.constant 0 : i32
    %c0_i32_0 = arith.constant 0 : i32
    return %arg0, %c0_i32 : i32, i32
  }
}

</mosaic_0001>

<bundles_post_ra>
// kernel: tpu_custom_call.1
= control target key start
LH: loop header
LB: loop body
LE: loop exit
PB: predicated region body
PF: predicated region fallthrough
CT: control target
= control target key end

     0   :  { %8 = vsyncpa [#allocation3], 0  ;;  %s215_s0 = inlined_call_operand.hbm [shape: f32[8,32], index: 0, kind: input, shape index: {}]   ;;  %s216_s1 = inlined_call_operand.hbm [shape: f32[8,32], index: 1, kind: input, shape index: {}]   ;;  %s217_s2 = inlined_call_operand.vmem [shape: f32[1,8], index: 2, kind: input, shape index: {}]   ;;  %s218_s3 = inlined_call_operand.hbm [shape: f32[8,8], index: 3, kind: output, shape index: {}]  }
   0x1   :  { %9 = vsyncpa [#allocation6], 0 }
   0x2   :  { %10 = vsyncpa [#allocation4], 0  ;;  %s16_s14 = sshll.u32 %s215_s0, 4  ;;  %s180_s15 = smov [#allocation2]   ;;  %s17_s14 = int_to_ptr.hbm [resolvable:$true] %s16_s14 }
   0x3   :  { %s18_s16 = sshll.u32 %s180_s15, 4  ;;  %s27_s19 = sshll.u32 %s216_s1, 4  ;;  %s19_s16 = int_to_ptr.vmem [resolvable:$true] %s18_s16  ;;  %s28_s19 = int_to_ptr.hbm [resolvable:$true] %s27_s19 }
   0x4   :  { %21 = dma.hbm_to_vmem [thread:$0]  %s17_s14, 128, %s19_s16, [#allocation3]  }
   0x5   :  { %s181_s20 = smov [#allocation5]  }
   0x6   :  { %s29_s21 = sshll.u32 %s181_s20, 4  ;;  %s30_s21 = int_to_ptr.vmem [resolvable:$true] %s29_s21 }
   0x7   :  { %32 = dma.hbm_to_vmem [thread:$0]  %s28_s19, 128, %s30_s21, [#allocation6]  }
   0x8   :  { %174 = dma.done.wait [#allocation3], 128  }
   0x9   :  { %175 = vsyncadd [#allocation3], 4294967168 }
   0xa   :  { %176 = dma.done.wait [#allocation6], 128  }
   0xb   :  { %177 = vsyncadd [#allocation6], 4294967168  ;;  %vm49_vm0 = vcmask 261120   ;;  %v44_v0 = vld [vmem:[#allocation5] sm:$0xff]  ;;  %v43_v1 = vld [vmem:[#allocation2] sm:$0xff]  ;;  %s182_s1 = smov [#allocation7]  }
   0xc   :  { %96 = vmatpush.xpose.msk.msra.mxu0 %vm49_vm0, %v44_v0  ;;  %v101_v2 = vld [vmem:[%s217_s2] ss:$0 sm:$0xff]  ;;  %s83_s23 = sshll.u32 %s182_s1, 4  ;;  %s85_s26 = sshll.u32 %s218_s3, 4  ;;  %vm76_vm1 = vcmask 64512   ;;  %s84_s23 = int_to_ptr.vmem [resolvable:$true] %s83_s23  ;;  %s86_s26 = int_to_ptr.hbm [resolvable:$true] %s85_s26 }
   0xf   :  { %97 = vmatmul.msk.f32.vlgmr.msra.gmra.mxu0 %vm49_vm0, %v43_v1 }
  0x8c   :  { %v73_v3 = vpop.f32.mrf.mxu0 }
  0x8d   :  { %v74_v4 = vadd.f32 %v101_v2, %v73_v3 }
  0x8f   :  { %77 = vst.msk [vmem:[#allocation7] sm:$0xff] %vm76_vm1, %v74_v4 }
  0x90   :  { %88 = dma.vmem_to_hbm [thread:$0]  %s84_s23, 128, %s86_s26, [#allocation4]  }
  0x91   :  { %178 = dma.done.wait [#allocation4], 128  }
  0x92   :  { %179 = vsyncadd [#allocation4], 4294967168 }
  0x93   :  { %93 = vsyncpa [#allocation3], 1 }
  0x94   :  { %94 = vsyncpa [#allocation6], 1 }
  0x95   :  { %95 = vsyncpa [#allocation4], 1 }

</bundles_post_ra>
